<compile_context>
chip_gen: v7x
topology: tpu7x:2x2x1
jax: 0.10.0
libtpu: 0.0.40
codegen_flags: <defaults>
</compile_context>

<pallas_src>
import jax
import jax.numpy as jnp
from jax import lax
from jax.experimental import pallas as pl
from jax.experimental.pallas import tpu as pltpu


def _tile(dim, pref):
    """Largest power-of-two-ish tile <= pref that divides dim (dim itself if small)."""
    if dim <= pref:
        return dim
    t = pref
    while dim % t != 0 and t > 1:
        t //= 2
    return max(t, 1)


def _epilogue(acc, bias_row, bits, noise_scale):
    """bias add -> +noise -> ReLU -> +noise on a finished accumulator tile."""
    out = acc + bias_row
    if noise_scale != 0.0:
        # bits in [0, 2^23); fold (u01 * 2 - 1) * scale into one mul + one sub.
        scale = 2.0 * noise_scale / float(1 << 23)
        n_in = bits[0].astype(jnp.float32) * scale - noise_scale
        n_out = bits[1].astype(jnp.float32) * scale - noise_scale
        out = jnp.maximum(out + n_in, 0.0) + n_out
    else:
        out = jnp.maximum(out, 0.0)
    return out


def _body(x_ref, w_ref, b_ref, bits_ref, o_ref, acc_ref, noise_scale):
    k = pl.program_id(2)

    @pl.when(k == 0)
    def _():
        acc_ref[...] = jnp.zeros_like(acc_ref)

    # x tile [tm, tk] @ PyTorch-layout weight tile [tn, tk] (contract dim1 vs dim1),
    # so no weight transpose is ever materialized.
    acc_ref[...] += lax.dot_general(
        x_ref[...], w_ref[...],
        dimension_numbers=(((1,), (1,)), ((), ())),
        preferred_element_type=jnp.float32)

    @pl.when(k == pl.num_programs(2) - 1)
    def _():
        bits = bits_ref[...] if bits_ref is not None else None
        o_ref[...] = _epilogue(acc_ref[...], b_ref[...], bits,
                               noise_scale).astype(o_ref.dtype)


def _make_kernel(noise_scale):
    if noise_scale != 0.0:
        def kernel(x_ref, w_ref, b_ref, bits_ref, o_ref, acc_ref):
            _body(x_ref, w_ref, b_ref, bits_ref, o_ref, acc_ref, noise_scale)
    else:
        def kernel(x_ref, w_ref, b_ref, o_ref, acc_ref):
            _body(x_ref, w_ref, b_ref, None, o_ref, acc_ref, 0.0)
    return kernel


def basic_block(x, weight, bias, seed, noise_scale=0.0):
    """x: [B, in_features]; weight: [out_features, in_features] (PyTorch layout);
    bias: [out_features]; seed: python int; noise_scale: static python float."""
    B, K = x.shape
    N = weight.shape[0]
    noise_scale = float(noise_scale)

    # Tile budget chosen to fit comfortably in scoped VMEM on v5e/v6e/v7x at f32.
    tm = _tile(B, 256)
    tn = _tile(N, 512)
    tk = _tile(K, 512)
    grid = (B // tm, N // tn, K // tk)

    b2d = bias.reshape(1, N).astype(jnp.float32)

    in_specs = [
        pl.BlockSpec((tm, tk), lambda i, j, k: (i, k)),   # x
        pl.BlockSpec((tn, tk), lambda i, j, k: (j, k)),   # weight (PyTorch [N, K])
        pl.BlockSpec((1, tn), lambda i, j, k: (0, j)),    # bias row
    ]
    args = [x, weight, b2d]
    bytes_accessed = (x.size + weight.size + b2d.size + B * N) * 4

    if noise_scale != 0.0:
        # Host-side uniform integer draws in [0, 2^23); per-tile slices via index_map
        # so every output tile gets independent noise.
        key = jax.random.PRNGKey(seed)
        bits = jax.random.randint(key, (2, B, N), 0, 1 << 23, dtype=jnp.int32)
        in_specs.append(pl.BlockSpec((2, tm, tn), lambda i, j, k: (0, i, j)))
        args.append(bits)
        bytes_accessed += bits.size * 4

    kernel = _make_kernel(noise_scale)

    return pl.pallas_call(
        kernel,
        out_shape=jax.ShapeDtypeStruct((B, N), jnp.float32),
        grid=grid,
        in_specs=in_specs,
        out_specs=pl.BlockSpec((tm, tn), lambda i, j, k: (i, j)),
        scratch_shapes=[pltpu.VMEM((tm, tn), jnp.float32)],
        compiler_params=pltpu.CompilerParams(
            dimension_semantics=("parallel", "parallel", "arbitrary")),
        cost_estimate=pl.CostEstimate(
            flops=2 * B * K * N, transcendentals=0,
            bytes_accessed=bytes_accessed),
    )(*args)


if __name__ == "__main__":
    key = jax.random.PRNGKey(0)
    k_x, k_w, k_b = jax.random.split(key, 3)

    B, in_features, out_features = 8, 32, 128
    noise_scale = 0.1

    # Deterministic parameter init (PyTorch Linear default: U(-1/sqrt(in), 1/sqrt(in))).
    bound = 1.0 / (in_features ** 0.5)
    weight = jax.random.uniform(k_w, (out_features, in_features),
                                minval=-bound, maxval=bound, dtype=jnp.float32)
    bias = jax.random.uniform(k_b, (out_features,),
                              minval=-bound, maxval=bound, dtype=jnp.float32)
    x = jax.random.normal(k_x, (B, in_features), dtype=jnp.float32)

    # Run with noise enabled.
    out = jax.block_until_ready(
        basic_block(x, weight, bias, seed=1234, noise_scale=noise_scale))

    # Pure-JAX reference of the noiseless path.
    lin = x @ weight.T + bias
    ref_no_noise = jnp.maximum(lin, 0.0)

    # 1) noise_scale=0 must match the reference exactly (up to float tolerance).
    out0 = jax.block_until_ready(
        basic_block(x, weight, bias, seed=1234, noise_scale=0.0))
    assert jnp.allclose(out0, ref_no_noise, atol=1e-5), "noise_scale=0 mismatch"

    # 2) with noise, result must stay within 2*noise_scale of the noiseless path
    #    (inner noise <= scale before ReLU, outer noise <= scale after; ReLU 1-Lipschitz).
    assert jnp.max(jnp.abs(out - ref_no_noise)) <= 2.0 * noise_scale + 1e-5, \
        "noise bound violated"
    assert out.shape == (B, out_features)

    print("KERNEL_OK")
</pallas_src>

<mosaic_0001>
module attributes {stable_mosaic.version = 11 : i64} {
  func.func @kernel(%arg0: i32, %arg1: i32, %arg2: i32, %arg3: memref<8x32xf32, #tpu.memory_space<vmem>>, %arg4: memref<128x32xf32, #tpu.memory_space<vmem>>, %arg5: memref<1x128xf32, #tpu.memory_space<vmem>>, %arg6: memref<2x8x128xi32, #tpu.memory_space<vmem>>, %arg7: memref<8x128xf32, #tpu.memory_space<vmem>>, %arg8: memref<8x128xf32, #tpu.memory_space<vmem>>) attributes {dimension_semantics = [#tpu.dimension_semantics<parallel>, #tpu.dimension_semantics<parallel>, #tpu.dimension_semantics<arbitrary>], iteration_bounds = array<i64: 1, 1, 1>, scalar_prefetch = 0 : i64, scratch_operands = 1 : i64, tpu.core_type = #tpu.core_type<tc>, window_params = [{transform_indices = @transform_0, window_bounds = array<i64: 8, 32>}, {transform_indices = @transform_1, window_bounds = array<i64: 128, 32>}, {transform_indices = @transform_2, window_bounds = array<i64: 1, 128>}, {transform_indices = @transform_3, window_bounds = array<i64: 2, 8, 128>}, {transform_indices = @transform_4, window_bounds = array<i64: 8, 128>}]} {
    %c0_i32 = arith.constant 0 : i32
    %0 = arith.cmpi eq, %arg2, %c0_i32 : i32
    %1 = arith.extui %0 : i1 to i32
    %c0_i32_0 = arith.constant 0 : i32
    %2 = arith.cmpi ne, %1, %c0_i32_0 : i32
    scf.if %2 {
      %cst_10 = arith.constant 0.000000e+00 : f32
      %12 = vector.broadcast %cst_10 : f32 to vector<8x128xf32>
      %c0_11 = arith.constant 0 : index
      %c0_12 = arith.constant 0 : index
      %13 = vector.load %arg8[%c0_11, %c0_12] : memref<8x128xf32, #tpu.memory_space<vmem>>, vector<8x128xf32>
      tpu.vector_store %arg8[%c0_11, %c0_12], %12 {strides = array<i32>} : memref<8x128xf32, #tpu.memory_space<vmem>>, vector<8x128xf32>,
    } else {
    }
    %c0 = arith.constant 0 : index
    %c0_1 = arith.constant 0 : index
    %3 = vector.load %arg8[%c0, %c0_1] : memref<8x128xf32, #tpu.memory_space<vmem>>, vector<8x128xf32>
    %c0_2 = arith.constant 0 : index
    %c0_3 = arith.constant 0 : index
    %4 = vector.load %arg3[%c0_2, %c0_3] : memref<8x32xf32, #tpu.memory_space<vmem>>, vector<8x32xf32>
    %c0_4 = arith.constant 0 : index
    %c0_5 = arith.constant 0 : index
    %5 = vector.load %arg4[%c0_4, %c0_5] : memref<128x32xf32, #tpu.memory_space<vmem>>, vector<128x32xf32>
    %cst = arith.constant dense<0.000000e+00> : vector<8x128xf32>
    %6 = tpu.matmul %4, %5, %cst {dimension_numbers = #tpu.dot_dimension_numbers<[1], [1], [0], [0], [0, 0, 1, 0], [], []>} : vector<8x32xf32>, vector<128x32xf32>, vector<8x128xf32> -> vector<8x128xf32>
    %7 = arith.addf %3, %6 : vector<8x128xf32>
    %c0_6 = arith.constant 0 : index
    %c0_7 = arith.constant 0 : index
    %8 = vector.load %arg8[%c0_6, %c0_7] : memref<8x128xf32, #tpu.memory_space<vmem>>, vector<8x128xf32>
    tpu.vector_store %arg8[%c0_6, %c0_7], %7 {strides = array<i32>} : memref<8x128xf32, #tpu.memory_space<vmem>>, vector<8x128xf32>,
    %c0_i32_8 = arith.constant 0 : i32
    %9 = arith.cmpi eq, %arg2, %c0_i32_8 : i32
    %10 = arith.extui %9 : i1 to i32
    %c0_i32_9 = arith.constant 0 : i32
    %11 = arith.cmpi ne, %10, %c0_i32_9 : i32
    scf.if %11 {
      %c0_10 = arith.constant 0 : index
      %c0_11 = arith.constant 0 : index
      %c0_12 = arith.constant 0 : index
      %12 = vector.load %arg6[%c0_10, %c0_11, %c0_12] : memref<2x8x128xi32, #tpu.memory_space<vmem>>, vector<2x8x128xi32>
      %c0_13 = arith.constant 0 : index
      %c0_14 = arith.constant 0 : index
      %13 = vector.load %arg8[%c0_13, %c0_14] : memref<8x128xf32, #tpu.memory_space<vmem>>, vector<8x128xf32>
      %c0_15 = arith.constant 0 : index
      %c0_16 = arith.constant 0 : index
      %14 = vector.load %arg5[%c0_15, %c0_16] : memref<1x128xf32, #tpu.memory_space<vmem>>, vector<1x128xf32>
      %15 = vector.broadcast %14 : vector<1x128xf32> to vector<8x128xf32>
      %16 = arith.addf %13, %15 : vector<8x128xf32>
      %17 = vector.extract_strided_slice %12 {offsets = [0, 0, 0], sizes = [1, 8, 128], strides = [1, 1, 1]} : vector<2x8x128xi32> to vector<1x8x128xi32>
      %18 = vector.shape_cast %17 : vector<1x8x128xi32> to vector<8x128xi32>
      %19 = arith.sitofp %18 : vector<8x128xi32> to vector<8x128xf32>
      %cst_17 = arith.constant 2.38418583E-8 : f32
      %20 = vector.broadcast %cst_17 : f32 to vector<8x128xf32>
      %21 = arith.mulf %19, %20 : vector<8x128xf32>
      %cst_18 = arith.constant 1.000000e-01 : f32
      %22 = vector.broadcast %cst_18 : f32 to vector<8x128xf32>
      %23 = arith.subf %21, %22 : vector<8x128xf32>
      %24 = vector.extract_strided_slice %12 {offsets = [1, 0, 0], sizes = [1, 8, 128], strides = [1, 1, 1]} : vector<2x8x128xi32> to vector<1x8x128xi32>
      %25 = vector.shape_cast %24 : vector<1x8x128xi32> to vector<8x128xi32>
      %26 = arith.sitofp %25 : vector<8x128xi32> to vector<8x128xf32>
      %cst_19 = arith.constant 2.38418583E-8 : f32
      %27 = vector.broadcast %cst_19 : f32 to vector<8x128xf32>
      %28 = arith.mulf %26, %27 : vector<8x128xf32>
      %cst_20 = arith.constant 1.000000e-01 : f32
      %29 = vector.broadcast %cst_20 : f32 to vector<8x128xf32>
      %30 = arith.subf %28, %29 : vector<8x128xf32>
      %31 = arith.addf %16, %23 : vector<8x128xf32>
      %cst_21 = arith.constant 0.000000e+00 : f32
      %32 = vector.broadcast %cst_21 : f32 to vector<8x128xf32>
      %33 = arith.maximumf %31, %32 : vector<8x128xf32>
      %34 = arith.addf %33, %30 : vector<8x128xf32>
      %c0_22 = arith.constant 0 : index
      %c0_23 = arith.constant 0 : index
      %35 = vector.load %arg7[%c0_22, %c0_23] : memref<8x128xf32, #tpu.memory_space<vmem>>, vector<8x128xf32>
      tpu.vector_store %arg7[%c0_22, %c0_23], %34 {strides = array<i32>} : memref<8x128xf32, #tpu.memory_space<vmem>>, vector<8x128xf32>,
    } else {
    }
    return
  }
  func.func @transform_0(%arg0: i32, %arg1: i32, %arg2: i32) -> (i32, i32) {
    %c0_i32 = arith.constant 0 : i32
    return %arg0, %arg2 : i32, i32
  }
  func.func @transform_1(%arg0: i32, %arg1: i32, %arg2: i32) -> (i32, i32) {
    %c0_i32 = arith.constant 0 : i32
    return %arg1, %arg2 : i32, i32
  }
  func.func @transform_2(%arg0: i32, %arg1: i32, %arg2: i32) -> (i32, i32) {
    %c0_i32 = arith.constant 0 : i32
    %c0_i32_0 = arith.constant 0 : i32
    return %c0_i32, %arg1 : i32, i32
  }
  func.func @transform_3(%arg0: i32, %arg1: i32, %arg2: i32) -> (i32, i32, i32) {
    %c0_i32 = arith.constant 0 : i32
    %c0_i32_0 = arith.constant 0 : i32
    return %c0_i32, %arg0, %arg1 : i32, i32, i32
  }
  func.func @transform_4(%arg0: i32, %arg1: i32, %arg2: i32) -> (i32, i32) {
    %c0_i32 = arith.constant 0 : i32
    return %arg0, %arg1 : i32, i32
  }
}

</mosaic_0001>

<bundles_post_ra>
// kernel: tpu_custom_call.1
= control target key start
LH: loop header
LB: loop body
LE: loop exit
PB: predicated region body
PF: predicated region fallthrough
CT: control target
= control target key end

     0   :  { %vm41_vm0 = vcmask 261120   ;;  %v335_v2 = vmov 0.0|0.0   ;;  %vm336_vm2 = vmmov 0   ;;  %v337_v5 = vmov 0.0   ;;  %s459_s0 = inlined_call_operand.vmem [shape: f32[8,32], index: 0, kind: input, shape index: {}]   ;;  %s460_s1 = inlined_call_operand.vmem [shape: f32[128,32], index: 1, kind: input, shape index: {}]   ;;  %s461_s2 = inlined_call_operand.vmem [shape: f32[1,128], index: 2, kind: input, shape index: {}]   ;;  %s462_s3 = inlined_call_operand.vmem [shape: s32[2,8,128], index: 3, kind: input, shape index: {}]   ;;  %s463_s4 = inlined_call_operand.hbm [shape: f32[8,128], index: 4, kind: output, shape index: {}]  }
   0x1   :  { %v25_v0 = vld [vmem:[%s460_s1] sm:$0xff]  ;;  %v26_v1 = vld [vmem:[%s460_s1 + $0x8] sm:$0xff]  ;;  %275 = vmatprep.subr.bf16.mxu0 %v335_v2  ;;  %vm372_vm1 = vmpackc.low %vm41_vm0, %vm41_vm0  ;;  %272 = vmatprep.mubr.msk.f32.mxu0 %vm336_vm2, %v337_v5 }
   0x2   :  { %v276_v3 = vpack.c.bf16 %v26_v1, %v25_v0  ;;  %v27_v6 = vld [vmem:[%s460_s1 + $0x10] sm:$0xff]  ;;  %v28_v7 = vld [vmem:[%s460_s1 + $0x18] sm:$0xff] }
   0x4   :  { %278 = vmatpush3.bf16.xpose.msk.msra.mxu0 %vm372_vm1, %v276_v3 }
   0x5   :  { %279 = vmatprep.subr.bf16.mxu0 %v335_v2 }
   0x6   :  { %9 = vsyncpa [#allocation4], 0  ;;  %v280_v8 = vpack.c.bf16 %v28_v7, %v27_v6  ;;  %v29_v9 = vld [vmem:[%s460_s1 + $0x20] sm:$0xff]  ;;  %v30_v10 = vld [vmem:[%s460_s1 + $0x28] sm:$0xff] }
   0x7   :  { %v284_v11 = vpack.c.bf16 %v30_v10, %v29_v9  ;;  %v31_v12 = vld [vmem:[%s460_s1 + $0x30] sm:$0xff]  ;;  %v32_v13 = vld [vmem:[%s460_s1 + $0x38] sm:$0xff]  ;;  %v33_v15 = vld [vmem:[%s460_s1 + $0x40] sm:$0xff] }
   0x8   :  { %v288_v14 = vpack.c.bf16 %v32_v13, %v31_v12  ;;  %v34_v16 = vld [vmem:[%s460_s1 + $0x48] sm:$0xff]  ;;  %v35_v18 = vld [vmem:[%s460_s1 + $0x50] sm:$0xff]  ;;  %v36_v19 = vld [vmem:[%s460_s1 + $0x58] sm:$0xff] }
   0x9   :  { %v292_v17 = vpack.c.bf16 %v34_v16, %v33_v15  ;;  %v296_v20 = vpack.c.bf16 %v36_v19, %v35_v18  ;;  %v37_v21 = vld [vmem:[%s460_s1 + $0x60] sm:$0xff]  ;;  %v38_v22 = vld [vmem:[%s460_s1 + $0x68] sm:$0xff]  ;;  %v39_v24 = vld [vmem:[%s460_s1 + $0x70] sm:$0xff] }
   0xa   :  { %v300_v23 = vpack.c.bf16 %v38_v22, %v37_v21  ;;  %v40_v25 = vld [vmem:[%s460_s1 + $0x78] sm:$0xff]  ;;  %v24_v27 = vld [vmem:[%s459_s0] sm:$0xff]  ;;  %v169_v30 = vld [vmem:[%s462_s3 + $0x8] sm:$0xff]  ;;  %s338_s0 = smov [#allocation3]  }
   0xb   :  { %v304_v26 = vpack.c.bf16 %v40_v25, %v39_v24  ;;  %v168_v28 = vld [vmem:[%s462_s3] sm:$0xff]  ;;  %v182_v32 = vcvt.s32.f32 %v169_v30  ;;  %s195_s28 = sshll.u32 %s338_s0, 4  ;;  %s196_s28 = int_to_ptr.vmem [resolvable:$true] %s195_s28 }
   0xc   :  { %282 = vmatpush3.bf16.xpose.msk.msra.mxu0 %vm372_vm1, %v280_v8  ;;  %v179_v29 = vcvt.s32.f32 %v168_v28  ;;  %v220_v33 = vld [vmem:[%s461_s2] ss:$0 sm:$0xff]  ;;  %s311_s3 = scalar_lea.vmem %s196_s28, 128  ;;  %p316_p1 = scmp.lt.s32.totalorder %s196_s28, %s196_s28 }
   0xd   :  { %283 = vmatprep.subr.bf16.mxu0 %v335_v2  ;;  %v183_v35 = vmul.f32 2.3841858e-08, %v182_v32  ;;  %p312_p0 = scmp.ne.s32.totalorder %s196_s28, %s311_s3  ;;  %p317_p2 = scmp.lt.s32.totalorder %s311_s3, %s311_s3 }
   0xe   :  { %v180_v31 = vmul.f32 2.3841858e-08, %v179_v29 }
   0xf   :  { %v222_v40 = vadd.f32 -0.1, %v183_v35  ;;  %p318_p3 = por %p317_p2, %p316_p1 }
  0x10   :  { %v221_v34 = vadd.f32 -0.1, %v180_v31 }
  0x11   :  { %p319_p4 = pnand %p318_p3, %p312_p0 }
  0x14   :  { %286 = vmatpush3.bf16.xpose.msk.msra.mxu0 %vm372_vm1, %v284_v11 }
  0x15   :  { %287 = vmatprep.subr.bf16.mxu0 %v335_v2 }
  0x1c   :  { %290 = vmatpush3.bf16.xpose.msk.msra.mxu0 %vm372_vm1, %v288_v14 }
  0x1d   :  { %291 = vmatprep.subr.bf16.mxu0 %v335_v2 }
  0x24   :  { %294 = vmatpush3.bf16.xpose.msk.msra.mxu0 %vm372_vm1, %v292_v17 }
  0x25   :  { %295 = vmatprep.subr.bf16.mxu0 %v335_v2 }
  0x2c   :  { %298 = vmatpush3.bf16.xpose.msk.msra.mxu0 %vm372_vm1, %v296_v20 }
  0x2d   :  { %299 = vmatprep.subr.bf16.mxu0 %v335_v2 }
  0x34   :  { %302 = vmatpush3.bf16.xpose.msk.msra.mxu0 %vm372_vm1, %v300_v23 }
  0x35   :  { %303 = vmatprep.subr.bf16.mxu0 %v335_v2 }
  0x3c   :  { %306 = vmatpush3.bf16.xpose.msk.msra.mxu0 %vm372_vm1, %v304_v26 }
  0x43   :  { %273 = vmatmul.mubr.msk.f32.vlgmr.msra.gmra.mrb[0].mxu0 %vm41_vm0, %v24_v27 }
 0x116   :  { %v159_v36 = vpop.f32.mrb[0].mxu0 }
 0x117   :  { %v178_v37 = vadd.f32 %v220_v33, %v159_v36  ;;  %v274_v38 = vpop.f32.mrb[1].mxu0 }
 0x119   :  { %v185_v39 = vadd.f32 %v221_v34, %v178_v37 }
 0x11b   :  { %v186_v41 = vmax.f32 %v185_v39, 0.0 }
 0x11d   :  { %v187_v42 = vadd.f32 %v222_v40, %v186_v41 }
 0x11f   :  { %188 = vst [vmem:[#allocation3] sm:$0xff] %v187_v42 }
 0x120   :  { %322 = shalt.err (!%p319_p4)
}
 0x121   :  { %s323_s30 = scalar_lea.hbm %s463_s4, 128 }
 0x122   :  { %p324_p5 = scmp.ne.s32.totalorder %s463_s4, %s323_s30  ;;  %p327_p6 = scmp.lt.u32.totalorder %s323_s30, %s463_s4 }
 0x124   :  { %p329_p7 = pnand %p327_p6, %p324_p5 }
 0x126   :  { %332 = shalt.err (!%p329_p7)
}
 0x127   :  { %198 = dma.vmem_to_hbm [thread:$0]  %s196_s28, 128, %s463_s4, [#allocation4]  }
 0x128   :  { %333 = dma.done.wait [#allocation4], 128  }
 0x129   :  { %334 = vsyncadd [#allocation4], 4294967168 }
 0x12a   :  { %202 = vsyncpa [#allocation4], 1 }

</bundles_post_ra>
